<compile_context>
chip_gen: v5e
topology: v5e:2x2
jax: 0.10.0
libtpu: 0.0.40
codegen_flags: <defaults>
</compile_context>

<pallas_src>
import jax
import jax.numpy as jnp
from jax.experimental import pallas as pl
from jax.experimental.pallas import tpu as pltpu


def _gpconv_kernel(w_ref, x_ref, o_ref):
    # w_ref: (Cout, Cin)   block-diagonal pointwise weight, VMEM-resident
    # x_ref: (Cin, TM)     one sample's spatial tile (channels=sublanes, spatial=lanes)
    # o_ref: (Cout, TM)    lane-dense output tile
    o_ref[...] = jnp.dot(
        w_ref[...], x_ref[...], preferred_element_type=jnp.float32
    ).astype(o_ref.dtype)


def _pick_tile_m(M, cin, cout, n_batch, itemsize, budget_bytes=8 << 20):
    """Largest lane-aligned spatial tile such that the double-buffered x/out
    tiles PLUS the (double-buffered) weight stay within budget_bytes — well
    under the scoped VMEM limit on v5e/v6e/v7x."""
    w_bytes = 2 * cout * cin * itemsize                 # resident weight, 2 buffers
    per_col = 2 * (cin + cout) * itemsize               # x + out tiles, 2 pipeline buffers each
    avail = max(budget_bytes - w_bytes, 128 * per_col)
    cap = max(128, (avail // per_col) // 128 * 128)
    cap = min(cap, 8192)                                # amortize per-step overhead (v7x)
    m_aligned = pl.cdiv(M, 128) * 128
    tile = min(cap, m_aligned)
    if n_batch == 1 and tile >= m_aligned and m_aligned > 128:
        # v7x megacore: guarantee >= 2 grid points for single-sample shapes.
        tile = max(128, pl.cdiv(pl.cdiv(M, 2), 128) * 128)
    return tile


def gpconv_forward(x, weights, *, max_tile_m=None):
    """x: (N, Cin, H, W) NCHW. weights: list of (Cout_g, Cin_g, 1, 1) per-group weights."""
    G = len(weights)
    N, Cin, H, W = x.shape
    assert Cin % G == 0
    cin_g = Cin // G
    cout_g = weights[0].shape[0]
    for w in weights:
        assert w.shape == (cout_g, cin_g, 1, 1), "all groups must have equal sub-dims"
    Cout = G * cout_g

    # Fuse the G per-group 1x1 weights into one block-diagonal (Cout, Cin) matrix:
    # the whole module becomes out[n] = W_bd @ x[n] on the contiguous NCHW slice.
    w_bd = jax.scipy.linalg.block_diag(
        *[w[:, :, 0, 0] for w in weights]
    ).astype(x.dtype)

    M = H * W
    itemsize = x.dtype.itemsize
    tile_m = _pick_tile_m(M, Cin, Cout, N, itemsize)
    if max_tile_m is not None:
        tile_m = max(128, min(tile_m, max_tile_m // 128 * 128))
    num_tiles = pl.cdiv(M, tile_m)

    x2 = x.reshape(N, Cin, M)  # contiguous NCHW view: channels x spatial (lane-dense)

    cost = pl.CostEstimate(
        flops=2 * Cout * Cin * M * N,
        transcendentals=0,
        bytes_accessed=(Cin + Cout) * M * N * itemsize + Cout * Cin * itemsize,
    )

    out = pl.pallas_call(
        _gpconv_kernel,
        out_shape=jax.ShapeDtypeStruct((N, Cout, M), x.dtype),
        grid=(N, num_tiles),
        in_specs=[
            # tiny weight: full-array block, constant index -> stays VMEM-resident
            pl.BlockSpec((Cout, Cin), lambda n, m: (0, 0)),
            # per-sample spatial tile; last (partial) tile is edge-handled by Pallas
            pl.BlockSpec((pl.Squeezed(), Cin, tile_m), lambda n, m: (n, 0, m)),
        ],
        out_specs=pl.BlockSpec((pl.Squeezed(), Cout, tile_m), lambda n, m: (n, 0, m)),
        compiler_params=pltpu.CompilerParams(
            dimension_semantics=("parallel", "parallel"),
            vmem_limit_bytes=32 << 20,
        ),
        cost_estimate=cost,
    )(w_bd, x2)

    return out.reshape(N, Cout, H, W)


def _reference(x, weights):
    """Pure-JAX reference of the PyTorch forward (per-group 1x1 conv + concat)."""
    G = len(weights)
    chunks = jnp.split(x, G, axis=1)
    outs = []
    for g in range(G):
        w = weights[g][:, :, 0, 0]  # (Cout_g, Cin_g)
        outs.append(jnp.einsum("oc,nchw->nohw", w, chunks[g]))
    return jnp.concatenate(outs, axis=1)


if __name__ == "__main__":
    # Module config: in_planes=8, out_planes=8, kernel_sizes=[3, 5] -> num_groups=2
    in_planes, out_planes = 8, 8
    kernel_sizes = [3, 5]
    G = len(kernel_sizes)
    sub_in = in_planes // G
    sub_out = out_planes // G

    key = jax.random.PRNGKey(0)
    kx, kx2, *kws = jax.random.split(key, 2 + G)

    # Deterministic per-group conv weights (Cout_g, Cin_g, 1, 1), no bias.
    fan_in = float(sub_in)  # 1x1 kernel
    bound = (1.0 / fan_in) ** 0.5
    weights = [
        jax.random.uniform(
            kws[g], (sub_out, sub_in, 1, 1), minval=-bound, maxval=bound,
            dtype=jnp.float32,
        )
        for g in range(G)
    ]

    # Case 1: lane-divisible spatial extent (H*W = 256).
    N, H, W = 2, 16, 16
    x = jax.random.normal(kx, (N, in_planes, H, W), dtype=jnp.float32)
    out = jax.block_until_ready(gpconv_forward(x, weights))
    ref = _reference(x, weights)
    assert out.shape == (N, out_planes, H, W)
    assert jnp.allclose(out, ref, atol=1e-5, rtol=1e-5)

    # Case 2: ragged spatial extent (H*W = 196), forced multi-tile so both the
    # interior and the masked partial-last-tile store paths are exercised.
    Hr, Wr = 14, 14
    xr = jax.random.normal(kx2, (N, in_planes, Hr, Wr), dtype=jnp.float32)
    out_r = jax.block_until_ready(gpconv_forward(xr, weights, max_tile_m=128))
    ref_r = _reference(xr, weights)
    assert out_r.shape == (N, out_planes, Hr, Wr)
    assert jnp.allclose(out_r, ref_r, atol=1e-5, rtol=1e-5)

    print("KERNEL_OK")
</pallas_src>

<mosaic_0001>
module attributes {stable_mosaic.version = 11 : i64} {
  func.func @_gpconv_kernel(%arg0: i32, %arg1: i32, %arg2: memref<8x8xf32, #tpu.memory_space<vmem>>, %arg3: memref<1x8x256xf32, #tpu.memory_space<vmem>>, %arg4: memref<1x8x256xf32, #tpu.memory_space<vmem>>) attributes {dimension_semantics = [#tpu.dimension_semantics<parallel>, #tpu.dimension_semantics<parallel>], iteration_bounds = array<i64: 2, 1>, scalar_prefetch = 0 : i64, scratch_operands = 0 : i64, tpu.core_type = #tpu.core_type<tc>, window_params = [{pipeline_mode = #tpu.pipeline_mode<synchronous>, transform_indices = @transform_0, window_bounds = array<i64: 8, 8>}, {transform_indices = @transform_1, window_bounds = array<i64: 1, 8, 256>}, {transform_indices = @transform_2, window_bounds = array<i64: 1, 8, 256>}]} {
    %c0 = arith.constant 0 : index
    %c0_0 = arith.constant 0 : index
    %0 = vector.load %arg2[%c0, %c0_0] : memref<8x8xf32, #tpu.memory_space<vmem>>, vector<8x8xf32>
    %c0_1 = arith.constant 0 : index
    %c0_2 = arith.constant 0 : index
    %c0_3 = arith.constant 0 : index
    %1 = vector.load %arg3[%c0_1, %c0_2, %c0_3] : memref<1x8x256xf32, #tpu.memory_space<vmem>>, vector<1x8x256xf32>
    %2 = vector.shape_cast %1 : vector<1x8x256xf32> to vector<8x256xf32>
    %cst = arith.constant dense<0.000000e+00> : vector<8x256xf32>
    %3 = tpu.matmul %0, %2, %cst {dimension_numbers = #tpu.dot_dimension_numbers<[1], [0], [0], [1], [0, 0, 1, 1], [], []>} : vector<8x8xf32>, vector<8x256xf32>, vector<8x256xf32> -> vector<8x256xf32>
    %c0_4 = arith.constant 0 : index
    %c0_5 = arith.constant 0 : index
    %c0_6 = arith.constant 0 : index
    %4 = vector.load %arg4[%c0_4, %c0_5, %c0_6] : memref<1x8x256xf32, #tpu.memory_space<vmem>>, vector<1x8x256xf32>
    %5 = vector.shape_cast %4 : vector<1x8x256xf32> to vector<8x256xf32>
    %6 = vector.shape_cast %3 : vector<8x256xf32> to vector<1x8x256xf32>
    tpu.vector_store %arg4[%c0_4, %c0_5, %c0_6], %6 {strides = array<i32>} : memref<1x8x256xf32, #tpu.memory_space<vmem>>, vector<1x8x256xf32>,
    return
  }
  func.func @transform_0(%arg0: i32, %arg1: i32) -> (i32, i32) {
    %c0_i32 = arith.constant 0 : i32
    %c0_i32_0 = arith.constant 0 : i32
    %c0_i32_1 = arith.constant 0 : i32
    return %c0_i32, %c0_i32_0 : i32, i32
  }
  func.func @transform_1(%arg0: i32, %arg1: i32) -> (i32, i32, i32) {
    %c0_i32 = arith.constant 0 : i32
    %c0_i32_0 = arith.constant 0 : i32
    return %arg0, %c0_i32, %arg1 : i32, i32, i32
  }
  func.func @transform_2(%arg0: i32, %arg1: i32) -> (i32, i32, i32) {
    %c0_i32 = arith.constant 0 : i32
    %c0_i32_0 = arith.constant 0 : i32
    return %arg0, %c0_i32, %arg1 : i32, i32, i32
  }
}

</mosaic_0001>

<bundles_post_ra>
// kernel: tpu_custom_call.1
= control target key start
LH: loop header
LB: loop body
LE: loop exit
PB: predicated region body
PF: predicated region fallthrough
CT: control target
= control target key end

     0   :  { %7 = vsyncpa [#allocation3], 0  ;;  %s768_s0 = inlined_call_operand.hbm [shape: f32[8,8], index: 0, kind: input, shape index: {}]   ;;  %s769_s1 = inlined_call_operand.hbm [shape: f32[2,8,256], index: 1, kind: input, shape index: {}]   ;;  %s770_s2 = inlined_call_operand.hbm [shape: f32[2,8,256], index: 2, kind: output, shape index: {}]  }
   0x1   :  { %8 = vsyncpa [#allocation6], 0 }
   0x2   :  { %10 = vsyncpa [#allocation6 + $0x1], 0 }
   0x3   :  { %11 = vsyncpa [#allocation4], 0 }
   0x4   :  { %13 = vsyncpa [#allocation4 + $0x1], 0  ;;  %s619_s9 = smov 0   ;;  %s621_s10 = smov 0  }
   0x5   :  { %s623_s11 = smov 0   ;;  %s625_s12 = smov 0  }
   0x6   :  { %s627_s13 = smov 0   ;;  %s629_s14 = smov 0  }
   0x7 LB: > { %s361_s15 = sadd.s32 4294967295, %s601_s14   ;;  %s362_s16 = sadd.s32 4294967294, %s601_s14   ;;  %s601_s14 = sphi %s629_s14, %s19_s14   ;;  %s597_s13 = sphi %s627_s13, %s782_s13   ;;  %s593_s12 = sphi %s625_s12, %s781_s12   ;;  %s589_s11 = sphi %s623_s11, %s780_s11   ;;  %s585_s10 = sphi %s621_s10, %s779_s10   ;;  %s581_s9 = sphi %s619_s9, %s778_s9  }
   0x8   : > { %p74_p0 = scmp.ne.s32.totalorder %s585_s10, %s581_s9  ;;  %p653_p1 = scmp.eq.s32.totalorder %s361_s15, 0 }
   0x9   : > { %p657_p2 = scmp.eq.s32.totalorder %s361_s15, 1  ;;  %p106_p3 = scmp.eq.s32.totalorder %s362_s16, 1 }
   0xa   : > { %p663_p4 = por %p653_p1, %p74_p0  ;;  %p363_p5 = scmp.ge.s32.totalorder %s601_s14, 1 }
   0xb   : > { %p668_p6 = por %p106_p3, %p74_p0  ;;  %p113_p7 = scmp.lt.s32.totalorder %s601_s14, 3 }
   0xc   : > { %s125_s23 = sshll.u32 %s768_s0, 4  ;;  %p365_p9 = scmp.ge.s32.totalorder %s601_s14, 2  ;;  %s126_s23 = int_to_ptr.hbm [resolvable:$true] %s125_s23 }
   0xd   : > { %p676_p8 = pnand %p363_p5, %p113_p7  ;;  %s603_s25 = smov [#allocation2]  }
   0xe   : > { %s127_s26 = sshll.u32 %s603_s25, 4  ;;  %s31_s27 = sadd.s32 1, %s597_s13  ;;  %s128_s26 = int_to_ptr.vmem [resolvable:$true] %s127_s26 }
   0xf   : > { %p390_p10 = pneg %p676_p8  ;;  %p33_p12 = scmp.ge.s32.totalorder %s31_s27, 2 }
  0x10   : > { %s61_s28 = sadd.s32 1, %s589_s11  ;;  %p68_p13 = scmp.ne.s32.totalorder %s589_s11, %s585_s10 }
  0x11   : > { %p391_p11 = pnand %p390_p10, %p653_p1  ;;  %p69_p0 = scmp.eq.s32.totalorder %s601_s14, 0 }
  0x12   : > { %s784_s27 = smov (%p33_p12, %s31_s27), 0  ;;  %p698_p5 = por %p657_p2, %p68_p13 }
  0x13   : > { %393 = dma.hbm_to_vmem [thread:$0]  (!%p391_p11), %s126_s23, 128, %s128_s26, [#allocation3]  }
  0x14   : > { %p692_p3 = por %p69_p0, %p68_p13  ;;  %s56_s3 = ssub.s32 %s597_s13, %s784_s27 }
  0x15   : > { %p403_p7 = scmp.lt.s32.totalorder %s601_s14, 2  ;;  %p59_p10 = scmp.eq.s32.totalorder %s56_s3, 0 }
  0x16   : > { %s138_s4 = sand.u32 1, %s589_s11   ;;  %s380_s7 = sshll.u32 %s597_s13, 4 }
  0x17   : > { %s366_s5 = sshll.u32 %s138_s4, 4  ;;  %s149_s16 = scalar_lea.hbm %s769_s1, %s380_s7 }
  0x18   : > { %s707_s6 = scalar_select %p59_p10, %s589_s11, %s61_s28  }
  0x19   : > { %s142_s21 = scalar_lea.vmem [#allocation5], %s366_s5  ;;  %s151_s18 = sshll.u32 %s149_s16, 4  ;;  %s152_s18 = int_to_ptr.hbm [resolvable:$true] %s151_s18 }
  0x1a   : > { %s153_s22 = sshll.u32 %s142_s21, 4  ;;  %p395_p2 = pnand %p403_p7, %p692_p3  ;;  %s154_s22 = int_to_ptr.vmem [resolvable:$true] %s153_s22 }
  0x1b   : > { %s139_s23 = scalar_lea.sflag [#allocation6], %s138_s4  ;;  %162 = sbr.rel (%p676_p8) target bundleno = 169 (0xa9), region = 28 }
  0x1c   : > { %397 = dma.hbm_to_vmem [thread:$0]  (!%p395_p2), %s152_s18, 256, %s154_s22, %s139_s23  }
  0x20   : > { %568 = dma.done.wait (%p653_p1), [#allocation3], 128  }
  0x21   : > { %570 = vsyncadd (%p653_p1), [#allocation3], 4294967168  ;;  %s722_s25 = sand.u32 1, %s585_s10  }
  0x22   : > { %s371_s26 = sshll.u32 %s722_s25, 4  ;;  %s170_s28 = scalar_lea.sflag [#allocation6], %s722_s25 }
  0x23   : > { %s173_s29 = scalar_lea.vmem [#allocation5], %s371_s26 }
  0x24   : > { %572 = dma.done.wait (%p663_p4), %s170_s28, 256  }
  0x25   : > { %574 = vsyncadd (%p663_p4), %s170_s28, 4294967040  ;;  %vm200_vm0 = vcmask 64512   ;;  %v198_v0 = vld [vmem:[%s173_s29] sm:$0xff]  ;;  %v199_v1 = vld [vmem:[%s173_s29 + $0x8] sm:$0xff]  ;;  %s381_s17 = sshll.u32 %s593_s12, 4  ;;  %s194_s5 = scalar_lea.vmem [#allocation7], %s371_s26 }
  0x26   : > { %v197_v2 = vld [vmem:[#allocation2] sm:$0xff]  ;;  %219 = vmatpush.msra.mxu0 %v198_v0  ;;  %239 = vmatpush.msra.mxu1 %v199_v1  ;;  %s260_s4 = scalar_lea.hbm %s770_s2, %s381_s17  ;;  %s262_s7 = sshll.u32 %s194_s5, 4  ;;  %s263_s7 = int_to_ptr.vmem [resolvable:$true] %s262_s7 }
  0x27   : > { %373 = vmatmul.msk.f32.vlgmr.msra.gmra.mxu0 %vm200_vm0, %v197_v2  ;;  %374 = vmatmul.msk.f32.vlgmr.msra.gmra.mxu1 %vm200_vm0, %v197_v2  ;;  %s264_s19 = sshll.u32 %s260_s4, 4  ;;  %s247_s8 = scalar_lea.sflag [#allocation4], %s722_s25  ;;  %s265_s19 = int_to_ptr.hbm [resolvable:$true] %s264_s19 }
  0x28   : > { %s529_s15 = sshra.s32 %s265_s19, 4  ;;  %s535_s22 = scalar_lea.hbm %s770_s2, 32  ;;  %s530_s15 = int_to_ptr.hbm [resolvable:$true] %s529_s15 }
  0x29   : > { %s531_s16 = scalar_lea.hbm %s530_s15, 16  ;;  %p536_p11 = scmp.lt.s32.totalorder %s530_s15, %s770_s2 }
  0x2a   : > { %p532_p1 = scmp.ne.s32.totalorder %s530_s15, %s531_s16  ;;  %p537_p12 = scmp.lt.s32.totalorder %s535_s22, %s531_s16 }
  0x2c   : > { %p533_p4 = pnand %p532_p1, %p698_p5  ;;  %p538_p13 = por %p537_p12, %p536_p11 }
  0x2e   : > { %p534_p8 = pneg %p533_p4 }
  0x30   : > { %p539_p0 = pnand %p538_p13, %p534_p8 }
  0xa4   : > { %v221_v3 = vpop.f32.mrf.mxu0  ;;  %v241_v4 = vpop.f32.mrf.mxu1 }
  0xa5   : > { %244 = vst [vmem:[%s194_s5] sm:$0xff] %v221_v3 }
  0xa6   : > { %245 = vst [vmem:[%s194_s5 + $0x8] sm:$0xff] %v241_v4 }
  0xa7   : > { %542 = shalt.err (!%p539_p0)
}
  0xa8   : > { %388 = dma.vmem_to_hbm [thread:$0]  (%p698_p5), %s263_s7, 256, %s265_s19, %s247_s8  }
  0xa9 PF: > { %s276_s25 = sand.u32 1, %s581_s9   ;;  %p399_p3 = pnand %p365_p9, %p668_p6 }
  0xaa   : > { %s277_s26 = scalar_lea.sflag [#allocation4], %s276_s25 }
  0xab   : > { %p400_p7 = pneg %p399_p3 }
  0xad   : > { %576 = dma.done.wait (%p400_p7), %s277_s26, 256  }
  0xae   : > { %578 = vsyncadd (%p400_p7), %s277_s26, 4294967040  ;;  %s19_s14 = sadd.s32 1, %s601_s14   ;;  %s778_s9 = smov %s585_s10 }
  0xaf   : > { %p16_p10 = scmp.ge.s32.totalorder %s19_s14, 4   ;;  %s779_s10 = smov %s589_s11 }
  0xb0   : > { %s780_s11 = smov %s707_s6  ;;  %s781_s12 = smov %s597_s13 }
  0xb1   : > { %s782_s13 = smov %s784_s27  ;;  %18 = sbr.rel (!%p16_p10) target bundleno = 7 (0x7), region = 78 }
  0xb6   :  { %283 = vsyncpa [#allocation3], 1 }
  0xb7   :  { %285 = vsyncpa [#allocation3 + $0x1], 1 }
  0xb8   :  { %286 = vsyncpa [#allocation6], 1 }
  0xb9   :  { %288 = vsyncpa [#allocation6 + $0x1], 1 }
  0xba   :  { %289 = vsyncpa [#allocation4], 1 }
  0xbb   :  { %291 = vsyncpa [#allocation4 + $0x1], 1 }

</bundles_post_ra>
